<compile_context>
chip_gen: v6e
topology: v6e:2x2x1
jax: 0.10.0
libtpu: 0.0.40
codegen_flags: <defaults>
</compile_context>

<pallas_src>
import functools

import jax
import jax.numpy as jnp
import numpy as np
from jax.experimental import pallas as pl
from jax.experimental.pallas import tpu as pltpu


def _round_up(x, m):
    return (x + m - 1) // m * m


def _normalize_rows2(x, m0, m1, s0, s1):
    """(x - mean_row) / std_row for a (2, TN) slab; params are Python floats."""
    if m0 == m1:
        if m0 != 0.0:
            x = x - m0
    else:
        row = jax.lax.broadcasted_iota(jnp.int32, x.shape, 0)
        x = x - jnp.where(row == 0, m0, m1)
    if s0 == s1:
        x = x * (1.0 / s0)
    else:
        row = jax.lax.broadcasted_iota(jnp.int32, x.shape, 0)
        x = x * jnp.where(row == 0, 1.0 / s0, 1.0 / s1)
    return x


def _match_label_kernel(boxes_ref, gt_ref, flags_ref, out_ref, *,
                        num_gt, cls_use_pos_only, cls_on_hard, reg_on_hard,
                        bbox_means, bbox_stds):
    """One (batch, lane-tile) grid step.

    boxes_ref : (1, 4, TN)  f32  rows [pcx, pcy, pw, ph]
    gt_ref    : (1, 8, Mp)  f32  rows [gcx, gcy, gw, gh, cls, 0, 0, 0]
    flags_ref : (1, 3, TN)  i32  rows [match_pos_flag, match_gt_id, ig_flag]
    out_ref   : (1, 6, TN)  f32  rows [cls, dx, dy, dw, dh, reg_mask]
    """
    m_pad = gt_ref.shape[2]
    tn = boxes_ref.shape[2]

    pbox = boxes_ref[0]          # (4, TN)
    gt = gt_ref[0]               # (8, Mp)
    flags = flags_ref[0]         # (3, TN)

    pos = flags[0:1, :]          # (1, TN) i32
    gid = flags[1:2, :]          # (1, TN) i32
    ig = flags[2:3, :]           # (1, TN) i32

    # ---- take_row(gt_boxes, match_gt_id): one-hot gather on the MXU.
    # K = round_up(M, 8) (NOT 128): one-hot build is only Mp/8 vreg-rows of
    # compare+cast and the dot's contraction dim is tiny.
    gid = jnp.where(gid < 0, gid + num_gt, gid)              # torch-style negative wrap
    iota_m = jax.lax.broadcasted_iota(jnp.int32, (m_pad, tn), 0)
    onehot_t = (iota_m == gid).astype(jnp.float32)           # (Mp, TN), exact {0,1}
    matched = jnp.dot(gt, onehot_t,
                      preferred_element_type=jnp.float32,
                      precision=jax.lax.Precision.HIGHEST)   # (8, TN), exact f32 gather
    # matched rows: [gcx, gcy, gw, gh, cls, 0, 0, 0]
    # TODO(synk): match_gt_id outside [-M, M) selects an all-zero gt column; the
    # resulting log(0) deltas are only safe if consumers apply reg_label_mask.

    # ---- class label bookkeeping (same op order as the torch module) ----
    cls = matched[4:5, :]
    cls = jnp.where(pos == 0, 0.0, cls)                      # cls_label[pos==0] = 0
    pos_match = pos > 0
    if reg_on_hard:
        reg_mask = pos_match
    else:
        reg_mask = pos_match & (cls > 0.0)
    if cls_on_hard:
        cls = jnp.abs(cls)                                   # cls_label.abs_()
    cls = jnp.where(pos < 0, -jnp.abs(cls), cls)             # ignore -> negative
    if cls_use_pos_only:
        cls = jnp.where(pos == 0, -1.0, cls)
    # class_encoder: identity; channel dim is row 0 of the output slab.
    cls = jnp.where((ig == 1) & (cls == 0.0), -1.0, cls)     # ig_flag handling

    # ---- bbox_encoder: RCNN XYWH deltas on sublane-packed (2, TN) slabs ----
    pc = pbox[0:2, :]            # [pcx, pcy]
    pwh = pbox[2:4, :]           # [pw, ph]
    gc = matched[0:2, :]         # [gcx, gcy]
    gwh = matched[2:4, :]        # [gw, gh]
    inv_pwh = pl.reciprocal(pwh, approx=True)                # EUP slot
    dc = (gc - pc) * inv_pwh                                 # [dcx, dcy]
    dwh = jnp.log(gwh * inv_pwh)                             # [dw, dh]
    dc = _normalize_rows2(dc, bbox_means[0], bbox_means[1], bbox_stds[0], bbox_stds[1])
    dwh = _normalize_rows2(dwh, bbox_means[2], bbox_means[3], bbox_stds[2], bbox_stds[3])

    # ---- grouped stores: 4 multi-row stores instead of 6 single-row ones ----
    out_ref[0, 0:1, :] = cls
    out_ref[0, 1:3, :] = dc
    out_ref[0, 3:5, :] = dwh
    out_ref[0, 5:6, :] = reg_mask.astype(jnp.float32)


def match_label_sep_encoder(boxes, gt_boxes, match_pos_flag, match_gt_id,
                            ig_flag=None, *,
                            cls_use_pos_only=False,
                            cls_on_hard=False,
                            reg_on_hard=False,
                            bbox_means=(0.0, 0.0, 0.0, 0.0),
                            bbox_stds=(0.1, 0.1, 0.2, 0.2),
                            lane_tile=4096):
    B, N, _ = boxes.shape
    _, M, G = gt_boxes.shape
    assert G >= 5
    if ig_flag is None:
        ig_flag = jnp.zeros((B, N), jnp.int32)

    # Lane tiling over N (last axis); pad N up to a multiple of the tile.
    TN = min(_round_up(N, 128), _round_up(lane_tile, 128))
    N_pad = _round_up(N, TN)
    n_tiles = N_pad // TN
    pad_n = N_pad - N

    # gt contraction dim padded only to a sublane multiple (was 128).
    G_pad = 8
    M_pad = _round_up(M, 8)

    # --- wrapper-side layout plumbing (fused elementwise + transpose + pad in XLA).
    # Predicted boxes -> center/size rows so the kernel never needs sublane rolls.
    boxes = boxes.astype(jnp.float32)
    pwh = boxes[..., 2:4] - boxes[..., 0:2]
    pc = boxes[..., 0:2] + 0.5 * pwh
    boxes_t = jnp.transpose(jnp.concatenate([pc, pwh], axis=-1), (0, 2, 1))  # (B,4,N)
    if pad_n:
        boxes_t = jnp.pad(boxes_t, ((0, 0), (0, 0), (0, pad_n)))
        # keep padded boxes well-formed (w = h = 1) so the delta math stays finite
        boxes_t = boxes_t.at[:, 2:4, N:].set(1.0)

    # GT boxes -> [gcx, gcy, gw, gh, cls] rows, channel-major, zero padded.
    gtb = gt_boxes.astype(jnp.float32)
    gwh = gtb[..., 2:4] - gtb[..., 0:2]
    gc = gtb[..., 0:2] + 0.5 * gwh
    gt_cs = jnp.concatenate([gc, gwh, gtb[..., 4:5]], axis=-1)               # (B,M,5)
    gt_t = jnp.transpose(gt_cs, (0, 2, 1))                                   # (B,5,M)
    gt_t = jnp.pad(gt_t, ((0, 0), (0, G_pad - 5), (0, M_pad - M)))           # (B,8,Mp)

    flags = jnp.stack([match_pos_flag.astype(jnp.int32),
                       match_gt_id.astype(jnp.int32),
                       ig_flag.astype(jnp.int32)], axis=1)                   # (B,3,N)
    if pad_n:
        flags = jnp.pad(flags, ((0, 0), (0, 0), (0, pad_n)))

    kernel = functools.partial(
        _match_label_kernel,
        num_gt=M,
        cls_use_pos_only=cls_use_pos_only,
        cls_on_hard=cls_on_hard,
        reg_on_hard=reg_on_hard,
        bbox_means=tuple(float(v) for v in bbox_means),
        bbox_stds=tuple(float(v) for v in bbox_stds),
    )

    C_OUT = 6   # [cls, dx, dy, dw, dh, reg_mask]
    slab = pl.pallas_call(
        kernel,
        grid=(B, n_tiles),
        in_specs=[
            pl.BlockSpec((1, 4, TN), lambda b, t: (b, 0, t)),
            pl.BlockSpec((1, G_pad, M_pad), lambda b, t: (b, 0, 0)),
            pl.BlockSpec((1, 3, TN), lambda b, t: (b, 0, t)),
        ],
        out_specs=pl.BlockSpec((1, C_OUT, TN), lambda b, t: (b, 0, t)),
        out_shape=jax.ShapeDtypeStruct((B, C_OUT, N_pad), jnp.float32),
        compiler_params=pltpu.CompilerParams(
            dimension_semantics=("parallel", "parallel")),
    )(boxes_t, gt_t, flags)

    # --- cheap XLA-side unpacking; flatten(1, -2) is a no-op for (B, N, C) ---
    cls_label = slab[:, 0, :N][..., None]                                # (B, N, 1)
    reg_label = jnp.transpose(slab[:, 1:5, :N], (0, 2, 1))               # (B, N, 4)
    cls_label_mask = cls_label >= 0.0
    reg_label_mask = jnp.broadcast_to((slab[:, 5, :N] > 0.5)[..., None],
                                      reg_label.shape)

    return dict(
        cls_label=cls_label,
        cls_label_mask=cls_label_mask,
        reg_label=reg_label,
        reg_label_mask=reg_label_mask,
    )


def _reference(boxes, gt_boxes, pos, gid, ig, *,
               cls_use_pos_only, cls_on_hard, reg_on_hard, means, stds):
    """Pure-JAX reference mirroring the PyTorch module."""
    M = gt_boxes.shape[1]
    gid_w = jnp.where(gid < 0, gid + M, gid)
    matched = jnp.take_along_axis(gt_boxes, gid_w[..., None], axis=1)    # (B, N, G)
    cls = matched[..., 4]
    cls = jnp.where(pos == 0, 0.0, cls)
    pos_match = pos > 0
    reg_mask = pos_match if reg_on_hard else pos_match & (cls > 0.0)
    if cls_on_hard:
        cls = jnp.abs(cls)
    cls = jnp.where(pos < 0, -jnp.abs(cls), cls)
    if cls_use_pos_only:
        cls = jnp.where(pos == 0, -1.0, cls)
    cls = jnp.where((ig == 1) & (cls == 0.0), -1.0, cls)
    pwh = boxes[..., 2:4] - boxes[..., 0:2]
    pc = boxes[..., 0:2] + 0.5 * pwh
    gwh = matched[..., 2:4] - matched[..., 0:2]
    gc = matched[..., 0:2] + 0.5 * gwh
    deltas = jnp.concatenate([(gc - pc) / pwh, jnp.log(gwh / pwh)], axis=-1)
    deltas = (deltas - jnp.asarray(means, jnp.float32)) / jnp.asarray(stds, jnp.float32)
    return cls[..., None], deltas, reg_mask[..., None]


if __name__ == "__main__":
    B, N, M, G = 2, 128, 8, 6   # batch, num pred boxes, num gt boxes, gt width (5+)

    key = jax.random.PRNGKey(0)
    k1, k2, k3, k4, k5, k6, k7 = jax.random.split(key, 7)

    # Predicted boxes: well-formed x1<x2, y1<y2.
    pxy = jax.random.uniform(k1, (B, N, 2), minval=0.0, maxval=50.0)
    pwh = jax.random.uniform(k2, (B, N, 2), minval=5.0, maxval=30.0)
    boxes = jnp.concatenate([pxy, pxy + pwh], axis=-1)                   # (B, N, 4)

    # GT boxes: [x1, y1, x2, y2, cls, extra], all valid.
    gxy = jax.random.uniform(k3, (B, M, 2), minval=0.0, maxval=50.0)
    gwh = jax.random.uniform(k4, (B, M, 2), minval=5.0, maxval=30.0)
    gcls = jax.random.randint(k5, (B, M, 1), 1, 5).astype(jnp.float32)
    gextra = jnp.ones((B, M, 1), jnp.float32)
    gt_boxes = jnp.concatenate([gxy, gxy + gwh, gcls, gextra], axis=-1)  # (B, M, 6)

    match_pos_flag = jax.random.randint(k6, (B, N), -1, 2)               # {-1, 0, 1}
    match_gt_id = jax.random.randint(k7, (B, N), 0, M)                   # [0, M)
    ig_flag = (jax.random.uniform(jax.random.fold_in(key, 99), (B, N)) < 0.2
               ).astype(jnp.int32)

    out = match_label_sep_encoder(
        boxes, gt_boxes, match_pos_flag, match_gt_id, ig_flag,
        cls_use_pos_only=False, cls_on_hard=False, reg_on_hard=False,
    )
    jax.block_until_ready(out)

    assert out["cls_label"].shape == (B, N, 1)
    assert out["cls_label_mask"].shape == (B, N, 1)
    assert out["reg_label"].shape == (B, N, 4)
    assert out["reg_label_mask"].shape == (B, N, 4)
    assert out["cls_label_mask"].dtype == jnp.bool_
    assert out["reg_label_mask"].dtype == jnp.bool_

    # Numerical sanity check against a pure-JAX reference.
    ref_cls, ref_reg, ref_rm = _reference(
        boxes, gt_boxes, match_pos_flag, match_gt_id, ig_flag,
        cls_use_pos_only=False, cls_on_hard=False, reg_on_hard=False,
        means=(0.0, 0.0, 0.0, 0.0), stds=(0.1, 0.1, 0.2, 0.2))
    np.testing.assert_allclose(np.asarray(out["cls_label"]),
                               np.asarray(ref_cls), atol=1e-5)
    np.testing.assert_array_equal(np.asarray(out["cls_label_mask"]),
                                  np.asarray(ref_cls >= 0.0))
    np.testing.assert_array_equal(
        np.asarray(out["reg_label_mask"]),
        np.broadcast_to(np.asarray(ref_rm), (B, N, 4)))
    finite = np.isfinite(np.asarray(ref_reg))
    np.testing.assert_allclose(np.asarray(out["reg_label"])[finite],
                               np.asarray(ref_reg)[finite],
                               rtol=5e-2, atol=0.5)

    print("KERNEL_OK")
</pallas_src>

<mosaic_0001>
module attributes {stable_mosaic.version = 11 : i64} {
  func.func @_match_label_kernel(%arg0: i32, %arg1: i32, %arg2: memref<1x4x128xf32, #tpu.memory_space<vmem>>, %arg3: memref<1x8x8xf32, #tpu.memory_space<vmem>>, %arg4: memref<1x3x128xi32, #tpu.memory_space<vmem>>, %arg5: memref<1x6x128xf32, #tpu.memory_space<vmem>>) attributes {dimension_semantics = [#tpu.dimension_semantics<parallel>, #tpu.dimension_semantics<parallel>], iteration_bounds = array<i64: 2, 1>, scalar_prefetch = 0 : i64, scratch_operands = 0 : i64, tpu.core_type = #tpu.core_type<tc>, window_params = [{transform_indices = @transform_0, window_bounds = array<i64: 1, 4, 128>}, {transform_indices = @transform_1, window_bounds = array<i64: 1, 8, 8>}, {transform_indices = @transform_2, window_bounds = array<i64: 1, 3, 128>}, {transform_indices = @transform_3, window_bounds = array<i64: 1, 6, 128>}]} {
    %c0 = arith.constant 0 : index
    %c0_0 = arith.constant 0 : index
    %c0_1 = arith.constant 0 : index
    %0 = vector.load %arg2[%c0, %c0_0, %c0_1] : memref<1x4x128xf32, #tpu.memory_space<vmem>>, vector<1x4x128xf32>
    %1 = vector.shape_cast %0 : vector<1x4x128xf32> to vector<4x128xf32>
    %c0_2 = arith.constant 0 : index
    %c0_3 = arith.constant 0 : index
    %c0_4 = arith.constant 0 : index
    %2 = vector.load %arg3[%c0_2, %c0_3, %c0_4] : memref<1x8x8xf32, #tpu.memory_space<vmem>>, vector<1x8x8xf32>
    %3 = vector.shape_cast %2 : vector<1x8x8xf32> to vector<8x8xf32>
    %c0_5 = arith.constant 0 : index
    %c0_6 = arith.constant 0 : index
    %c0_7 = arith.constant 0 : index
    %4 = vector.load %arg4[%c0_5, %c0_6, %c0_7] : memref<1x3x128xi32, #tpu.memory_space<vmem>>, vector<1x3x128xi32>
    %5 = vector.shape_cast %4 : vector<1x3x128xi32> to vector<3x128xi32>
    %6 = vector.extract_strided_slice %5 {offsets = [0, 0], sizes = [1, 128], strides = [1, 1]} : vector<3x128xi32> to vector<1x128xi32>
    %7 = vector.extract_strided_slice %5 {offsets = [1, 0], sizes = [1, 128], strides = [1, 1]} : vector<3x128xi32> to vector<1x128xi32>
    %8 = vector.extract_strided_slice %5 {offsets = [2, 0], sizes = [1, 128], strides = [1, 1]} : vector<3x128xi32> to vector<1x128xi32>
    %c0_i32 = arith.constant 0 : i32
    %9 = vector.broadcast %c0_i32 : i32 to vector<1x128xi32>
    %10 = arith.cmpi slt, %7, %9 : vector<1x128xi32>
    %c8_i32 = arith.constant 8 : i32
    %11 = vector.broadcast %c8_i32 : i32 to vector<1x128xi32>
    %12 = arith.addi %7, %11 : vector<1x128xi32>
    %13 = arith.select %10, %12, %7 : vector<1x128xi1>, vector<1x128xi32>
    %14 = tpu.iota {dimensions = array<i32: 0>} : vector<8x128xi32>
    %15 = vector.broadcast %13 : vector<1x128xi32> to vector<8x128xi32>
    %16 = arith.cmpi eq, %14, %15 : vector<8x128xi32>
    %17 = arith.extui %16 : vector<8x128xi1> to vector<8x128xi32>
    %18 = arith.sitofp %17 : vector<8x128xi32> to vector<8x128xf32>
    %cst = arith.constant dense<0.000000e+00> : vector<8x128xf32>
    %19 = tpu.matmul %3, %18, %cst {dimension_numbers = #tpu.dot_dimension_numbers<[1], [0], [0], [1], [0, 0, 1, 1], [], []>, precision = #tpu.contract_precision<fp32>} : vector<8x8xf32>, vector<8x128xf32>, vector<8x128xf32> -> vector<8x128xf32>
    %20 = vector.extract_strided_slice %19 {offsets = [4, 0], sizes = [1, 128], strides = [1, 1]} : vector<8x128xf32> to vector<1x128xf32>
    %c0_i32_8 = arith.constant 0 : i32
    %21 = vector.broadcast %c0_i32_8 : i32 to vector<1x128xi32>
    %22 = arith.cmpi eq, %6, %21 : vector<1x128xi32>
    %cst_9 = arith.constant 0.000000e+00 : f32
    %23 = vector.broadcast %cst_9 : f32 to vector<1x128xf32>
    %24 = arith.select %22, %23, %20 : vector<1x128xi1>, vector<1x128xf32>
    %c0_i32_10 = arith.constant 0 : i32
    %25 = vector.broadcast %c0_i32_10 : i32 to vector<1x128xi32>
    %26 = arith.cmpi sgt, %6, %25 : vector<1x128xi32>
    %cst_11 = arith.constant 0.000000e+00 : f32
    %27 = vector.broadcast %cst_11 : f32 to vector<1x128xf32>
    %28 = arith.cmpf ogt, %24, %27 : vector<1x128xf32>
    %29 = arith.andi %26, %28 : vector<1x128xi1>
    %c0_i32_12 = arith.constant 0 : i32
    %30 = vector.broadcast %c0_i32_12 : i32 to vector<1x128xi32>
    %31 = arith.cmpi slt, %6, %30 : vector<1x128xi32>
    %32 = math.absf %24 : vector<1x128xf32>
    %cst_13 = arith.constant 0.000000e+00 : f32
    %33 = vector.broadcast %cst_13 : f32 to vector<1x128xf32>
    %34 = arith.subf %33, %32 : vector<1x128xf32>
    %35 = arith.select %31, %34, %24 : vector<1x128xi1>, vector<1x128xf32>
    %c1_i32 = arith.constant 1 : i32
    %36 = vector.broadcast %c1_i32 : i32 to vector<1x128xi32>
    %37 = arith.cmpi eq, %8, %36 : vector<1x128xi32>
    %cst_14 = arith.constant 0.000000e+00 : f32
    %38 = vector.broadcast %cst_14 : f32 to vector<1x128xf32>
    %39 = arith.cmpf oeq, %35, %38 : vector<1x128xf32>
    %40 = arith.andi %37, %39 : vector<1x128xi1>
    %cst_15 = arith.constant -1.000000e+00 : f32
    %41 = vector.broadcast %cst_15 : f32 to vector<1x128xf32>
    %42 = arith.select %40, %41, %35 : vector<1x128xi1>, vector<1x128xf32>
    %43 = vector.extract_strided_slice %1 {offsets = [0, 0], sizes = [2, 128], strides = [1, 1]} : vector<4x128xf32> to vector<2x128xf32>
    %44 = vector.extract_strided_slice %1 {offsets = [2, 0], sizes = [2, 128], strides = [1, 1]} : vector<4x128xf32> to vector<2x128xf32>
    %45 = vector.extract_strided_slice %19 {offsets = [0, 0], sizes = [2, 128], strides = [1, 1]} : vector<8x128xf32> to vector<2x128xf32>
    %46 = vector.extract_strided_slice %19 {offsets = [2, 0], sizes = [2, 128], strides = [1, 1]} : vector<8x128xf32> to vector<2x128xf32>
    %47 = tpu.reciprocal %44 {approx = true} : vector<2x128xf32> -> vector<2x128xf32>
    %48 = arith.subf %45, %43 : vector<2x128xf32>
    %49 = arith.mulf %48, %47 : vector<2x128xf32>
    %50 = arith.mulf %46, %47 : vector<2x128xf32>
    %51 = math.log %50 : vector<2x128xf32>
    %cst_16 = arith.constant 1.000000e+01 : f32
    %52 = vector.broadcast %cst_16 : f32 to vector<2x128xf32>
    %53 = arith.mulf %49, %52 : vector<2x128xf32>
    %cst_17 = arith.constant 5.000000e+00 : f32
    %54 = vector.broadcast %cst_17 : f32 to vector<2x128xf32>
    %55 = arith.mulf %51, %54 : vector<2x128xf32>
    %c0_18 = arith.constant 0 : index
    %c0_19 = arith.constant 0 : index
    %c0_20 = arith.constant 0 : index
    %56 = vector.load %arg5[%c0_18, %c0_19, %c0_20] : memref<1x6x128xf32, #tpu.memory_space<vmem>>, vector<1x1x128xf32>
    %57 = vector.shape_cast %56 : vector<1x1x128xf32> to vector<1x128xf32>
    %58 = vector.shape_cast %42 : vector<1x128xf32> to vector<1x1x128xf32>
    tpu.vector_store %arg5[%c0_18, %c0_19, %c0_20], %58 {strides = array<i32>} : memref<1x6x128xf32, #tpu.memory_space<vmem>>, vector<1x1x128xf32>,
    %c0_21 = arith.constant 0 : index
    %c1 = arith.constant 1 : index
    %c0_22 = arith.constant 0 : index
    %59 = vector.load %arg5[%c0_21, %c1, %c0_22] : memref<1x6x128xf32, #tpu.memory_space<vmem>>, vector<1x2x128xf32>
    %60 = vector.shape_cast %59 : vector<1x2x128xf32> to vector<2x128xf32>
    %61 = vector.shape_cast %53 : vector<2x128xf32> to vector<1x2x128xf32>
    tpu.vector_store %arg5[%c0_21, %c1, %c0_22], %61 {strides = array<i32>} : memref<1x6x128xf32, #tpu.memory_space<vmem>>, vector<1x2x128xf32>,
    %c0_23 = arith.constant 0 : index
    %c3 = arith.constant 3 : index
    %c0_24 = arith.constant 0 : index
    %62 = vector.load %arg5[%c0_23, %c3, %c0_24] : memref<1x6x128xf32, #tpu.memory_space<vmem>>, vector<1x2x128xf32>
    %63 = vector.shape_cast %62 : vector<1x2x128xf32> to vector<2x128xf32>
    %64 = vector.shape_cast %55 : vector<2x128xf32> to vector<1x2x128xf32>
    tpu.vector_store %arg5[%c0_23, %c3, %c0_24], %64 {strides = array<i32>} : memref<1x6x128xf32, #tpu.memory_space<vmem>>, vector<1x2x128xf32>,
    %65 = arith.extui %29 : vector<1x128xi1> to vector<1x128xi32>
    %66 = arith.sitofp %65 : vector<1x128xi32> to vector<1x128xf32>
    %c0_25 = arith.constant 0 : index
    %c5 = arith.constant 5 : index
    %c0_26 = arith.constant 0 : index
    %67 = vector.load %arg5[%c0_25, %c5, %c0_26] : memref<1x6x128xf32, #tpu.memory_space<vmem>>, vector<1x1x128xf32>
    %68 = vector.shape_cast %67 : vector<1x1x128xf32> to vector<1x128xf32>
    %69 = vector.shape_cast %66 : vector<1x128xf32> to vector<1x1x128xf32>
    tpu.vector_store %arg5[%c0_25, %c5, %c0_26], %69 {strides = array<i32>} : memref<1x6x128xf32, #tpu.memory_space<vmem>>, vector<1x1x128xf32>,
    return
  }
  func.func @transform_0(%arg0: i32, %arg1: i32) -> (i32, i32, i32) {
    %c0_i32 = arith.constant 0 : i32
    %c0_i32_0 = arith.constant 0 : i32
    return %arg0, %c0_i32, %arg1 : i32, i32, i32
  }
  func.func @transform_1(%arg0: i32, %arg1: i32) -> (i32, i32, i32) {
    %c0_i32 = arith.constant 0 : i32
    %c0_i32_0 = arith.constant 0 : i32
    %c0_i32_1 = arith.constant 0 : i32
    return %arg0, %c0_i32, %c0_i32_0 : i32, i32, i32
  }
  func.func @transform_2(%arg0: i32, %arg1: i32) -> (i32, i32, i32) {
    %c0_i32 = arith.constant 0 : i32
    %c0_i32_0 = arith.constant 0 : i32
    return %arg0, %c0_i32, %arg1 : i32, i32, i32
  }
  func.func @transform_3(%arg0: i32, %arg1: i32) -> (i32, i32, i32) {
    %c0_i32 = arith.constant 0 : i32
    %c0_i32_0 = arith.constant 0 : i32
    return %arg0, %c0_i32, %arg1 : i32, i32, i32
  }
}

</mosaic_0001>

<bundles_post_ra>
// kernel: tpu_custom_call.1
= control target key start
LH: loop header
LB: loop body
LE: loop exit
PB: predicated region body
PF: predicated region fallthrough
CT: control target
= control target key end

     0   :  { %8 = vsyncpa [#allocation3], 0  ;;  %s1256_s0 = inlined_call_operand.vmem [shape: f32[2,4,128], index: 0, kind: input, shape index: {}]   ;;  %s1257_s1 = inlined_call_operand.hbm [shape: f32[2,8,8], index: 1, kind: input, shape index: {}]   ;;  %s1258_s2 = inlined_call_operand.vmem [shape: s32[2,3,128], index: 2, kind: input, shape index: {}]   ;;  %s1259_s3 = inlined_call_operand.vmem [shape: f32[2,6,128], index: 3, kind: output, shape index: {}]  }
   0x1   :  { %10 = vsyncpa [#allocation3 + $0x1], 0  ;;  %s1106_s12 = smov 0   ;;  %s1108_s13 = smov 0  }
   0x2   :  { %s1110_s14 = smov 0   ;;  %s1112_s15 = smov 0  }
   0x3   :  { %s1114_s16 = smov 0   ;;  %s1116_s17 = smov 0  }
   0x4 LB: > { %s878_s18 = sadd.s32 4294967295, %s1079_s17   ;;  %s28_s19 = sadd.s32 1, %s1075_s16  ;;  %s1079_s17 = sphi %s1116_s17, %s16_s17   ;;  %s1075_s16 = sphi %s1114_s16, %s1267_s16   ;;  %s1071_s15 = sphi %s1112_s15, %s1266_s15   ;;  %s1067_s14 = sphi %s1110_s14, %s1265_s14   ;;  %s1063_s13 = sphi %s1108_s13, %s1264_s13   ;;  %s1059_s12 = sphi %s1106_s12, %s1263_s12  }
   0x5   : > { %p30_p0 = scmp.ge.s32.totalorder %s28_s19, 2  ;;  %s63_s20 = sadd.s32 1, %s1067_s14 }
   0x6   : > { %p70_p1 = scmp.ne.s32.totalorder %s1067_s14, %s1063_s13  ;;  %p71_p2 = scmp.eq.s32.totalorder %s1079_s17, 0 }
   0x7   : > { %s1269_s19 = smov (%p30_p0, %s28_s19), 0  ;;  %p76_p4 = scmp.ne.s32.totalorder %s1063_s13, %s1059_s12 }
   0x8   : > { %p1142_p3 = por %p71_p2, %p70_p1  ;;  %s60_s22 = ssub.s32 %s1075_s16, %s1269_s19 }
   0x9   : > { %p77_p5 = scmp.eq.s32.totalorder %s878_s18, 0  ;;  %p61_p6 = scmp.eq.s32.totalorder %s60_s22, 0 }
   0xa   : > { %p944_p8 = scmp.lt.s32.totalorder %s1079_s17, 2  ;;  %s166_s25 = sand.u32 1, %s1067_s14  }
   0xb   : > { %p1149_p7 = por %p77_p5, %p76_p4  ;;  %s883_s26 = sshll.u32 %s1075_s16, 7 }
   0xc   : > { %s1155_s24 = scalar_select %p61_p6, %s1067_s14, %s63_s20  }
   0xd   : > { %s882_s27 = sshll.u32 %s166_s25, 3  ;;  %s175_s30 = scalar_lea.hbm %s1257_s1, %s883_s26 }
   0xe   : > { %s170_s4 = scalar_lea.vmem [#allocation2], %s882_s27  ;;  %p1164_p9 = pnand %p944_p8, %p1142_p3 }
   0xf   : > { %s177_s5 = sshll.u32 %s170_s4, 4  ;;  %p884_p10 = scmp.ge.s32.totalorder %s1079_s17, 1  ;;  %s178_s5 = int_to_ptr.vmem [resolvable:$true] %s177_s5 }
  0x10   : > { %p192_p11 = scmp.lt.s32.totalorder %s1079_s17, 3  ;;  %s167_s7 = scalar_lea.sflag [#allocation3], %s166_s25 }
  0x11   : > { %p1003_p12 = pneg %p1164_p9  ;;  %s1014_s8 = scalar_lea.vmem %s178_s5, 128 }
  0x12   : > { %p1015_p13 = scmp.ne.s32.totalorder %s178_s5, %s1014_s8  ;;  %s1081_s9 = smov [#allocation2]  }
  0x13   : > { %s1019_s10 = sshll.u32 %s1081_s9, 4  ;;  %s1020_s10 = int_to_ptr.vmem [resolvable:$false] %s1019_s10 }
  0x14   : > { %p1017_p0 = pnand %p1015_p13, %p1003_p12  ;;  %s1021_s11 = scalar_lea.vmem %s1020_s10, 256 }
  0x15   : > { %p1022_p2 = scmp.lt.s32.totalorder %s178_s5, %s1020_s10  ;;  %p1023_p3 = scmp.lt.s32.totalorder %s1021_s11, %s1014_s8 }
  0x16   : > { %p1018_p1 = pneg %p1017_p0 }
  0x17   : > { %p1024_p4 = por %p1023_p3, %p1022_p2 }
  0x19   : > { %p1025_p5 = pnand %p1024_p4, %p1018_p1 }
  0x1b   : > { %1028 = shalt.err (!%p1025_p5)
}
  0x1c   : > { %943 = dma.hbm_to_vmem [thread:$0]  (!%p1164_p9), %s175_s30, 128, %s178_s5, %s167_s7  }
  0x1d   : > { %p193_p6 = pnand %p884_p10, %p192_p11 }
  0x1e   : > { %s198_s12 = sand.u32 (!%p193_p6), 1, %s1063_s13  }
  0x1f   : > { %196 = sbr.rel (%p193_p6) target bundleno = 283 (0x11b), region = 32  ;;  %s885_s18 = sshll.u32 (!%p193_p6), %s198_s12, 3 }
  0x20   : > { %s199_s20 = scalar_lea.sflag (!%p193_p6), [#allocation3], %s198_s12  ;;  %s202_s21 = scalar_lea.vmem (!%p193_p6), [#allocation2], %s885_s18 }
  0x24   : > { %1054 = dma.done.wait (%p1149_p7), %s199_s20, 128  }
  0x25   : > { %1056 = vsyncadd (%p1149_p7), %s199_s20, 4294967168  ;;  %p241_p8 = scmp.lt.s32.totalorder %s1071_s15, 1  ;;  %v268_v0 = vlaneseq  ;;  %v1082_v1 = vmov 0.0   ;;  %vm1083_vm0 = vmmov 0   ;;  %vm277_vm1 = vcmask 64512   ;;  %v263_v5 = vld [vmem:[%s202_s21] sm:$0xff] }
  0x26   : > { %908 = vmatprep.subr.mxu0 %v1082_v1  ;;  %910 = vmatprep.mubr.msk.f32.mxu0 %vm1083_vm0, %v1082_v1  ;;  %v279_v7 = vsel %vm277_vm1, %v263_v5, 0  ;;  %v1084_v13 = vmov 1.0   ;;  %v1085_v51 = vmov 0  }
  0x27   : > { %s1271_s15 = smov (!%p241_p8, %s1071_s15), 1  ;;  %913 = vmatprep.subr.mxu1 %v1082_v1  ;;  %915 = vmatprep.mubr.msk.f32.mxu1 %vm1083_vm0, %v1082_v1  ;;  %v269_v2 = vshrl.u32 %v268_v0, 7  ;;  %v347_v8 = vand.u32 4294901760, %v279_v7 }
  0x28   : > { %s886_s22 = sshll.u32 %s1271_s15, 2  ;;  %s888_s30 = sshll.u32 %s1271_s15, 3 }
  0x29   : > { %s254_s26 = scalar_lea.vmem %s1258_s2, %s886_s22  ;;  %v272_v4 = vsub.s32 1, %v269_v2  ;;  %v348_v11 = vsub.f32 %v279_v7, %v347_v8  ;;  %s247_s29 = scalar_lea.vmem %s1256_s0, %s886_s22 }
  0x2a   : > { %v1199_v3 = vld [vmem:[%s254_s26] sm:$0x7]  ;;  %s261_s6 = scalar_lea.vmem %s1259_s3, %s888_s30 }
  0x2b   : > { %vm265_vm2 = vcmp.lt.s32.totalorder %v1199_v3, 0  ;;  %v266_v6 = vadd.s32 8, %v1199_v3  ;;  %v349_v12 = vand.u32 4294901760, %v348_v11  ;;  %v262_v21 = vld [vmem:[%s247_s29] sm:$0xf]  ;;  %vm727_vm4 = vcmp.eq.s32.totalorder %v1199_v3, 0 }
  0x2c   : > { %997 = vrcp.f32 %v262_v21  ;;  %vm732_vm5 = vcmp.gt.s32.totalorder %v1199_v3, 0  ;;  %vm738_vm9 = vcmp.eq.s32.totalorder %v1199_v3, 1 }
  0x2d   : > { %v267_v9 = vsel %vm265_vm2, %v266_v6, %v1199_v3  ;;  %v350_v15 = vsub.f32 %v348_v11, %v349_v12 }
  0x2e   : > { %v273_v10 = vrot.slane %v267_v9, %v272_v4 }
  0x2f   : > { %v351_v17 = vand.u32 4294901760, %v350_v15 }
  0x30   : > { %vm274_vm3 = vcmp.eq.s32.totalorder %v269_v2, %v273_v10 }
  0x31   : > { %909 = vmatpush3.msk.msra.mxu0 %vm274_vm3, %v1084_v13  ;;  %v889_v14 = vsel %vm274_vm3, 1.0, %v1082_v1 }
  0x32   : > { %918 = vmatprep.subr.mxu0 %v1082_v1  ;;  %v389_v16 = vsub.f32 %v889_v14, %v889_v14  ;;  %911 = vmatmul.mubr.f32.vlgmr.msra.gmra.mxu0 %v351_v17 }
  0x33   : > { %920 = vmatprep.mubr.msk.f32.mxu0 %vm1083_vm0, %v1082_v1 }
  0x34   : > { %v390_v18 = vand.u32 4294901760, %v389_v16  ;;  %919 = vmatpush3.msra.mxu0 %v389_v16 }
  0x35   : > { %928 = vmatprep.subr.mxu0 %v1082_v1 }
  0x36   : > { %v391_v19 = vsub.f32 %v389_v16, %v390_v18  ;;  %921 = vmatmul.mubr.f32.vlgmr.msra.gmra.mxu0 %v348_v11 }
  0x37   : > { %929 = vmatpush3.msra.mxu0 %v390_v18  ;;  %930 = vmatprep.mubr.msk.f32.mxu0 %vm1083_vm0, %v1082_v1 }
  0x38   : > { %v392_v20 = vand.u32 4294901760, %v391_v19 }
  0x39   : > { %v998_v34 = vpop.eup %997 }
  0x3a   : > { %914 = vmatpush3.msra.mxu1 %v392_v20  ;;  %931 = vmatmul.mubr.f32.vlgmr.msra.gmra.mxu0 %v347_v8  ;;  %v751_v39 = vrot.slane %v998_v34, 2 }
  0x3b   : > { %916 = vmatmul.mubr.f32.vlgmr.msra.gmra.mxu1 %v347_v8  ;;  %923 = vmatprep.subr.mxu1 %v1082_v1 }
  0x3c   : > { %924 = vmatpush3.msk.msra.mxu1 %vm274_vm3, %v1084_v13  ;;  %925 = vmatprep.mubr.msk.f32.mxu1 %vm1083_vm0, %v1082_v1 }
  0x3d   : > { %933 = vmatprep.subr.mxu1 %v1082_v1 }
  0x3f   : > { %926 = vmatmul.mubr.f32.vlgmr.msra.gmra.mxu1 %v349_v12 }
  0x40   : > { %934 = vmatpush3.msk.msra.mxu1 %vm274_vm3, %v1084_v13  ;;  %935 = vmatprep.mubr.msk.f32.mxu1 %vm1083_vm0, %v1082_v1 }
  0x43   : > { %936 = vmatmul.mubr.f32.vlgmr.msra.gmra.mxu1 %v347_v8 }
  0xf2   : > { %v353_v22 = vpop.f32.mrf.mxu0 }
  0xf4   : > { %v912_v23 = vpop.f32.mrf.mxu0 }
  0xf6   : > { %v503_v24 = vpop.f32.mrf.mxu0 }
  0xf8   : > { %v922_v27 = vpop.f32.mrf.mxu0 }
  0xfa   : > { %v651_v30 = vpop.f32.mrf.mxu0 }
  0xfb   : > { %v429_v25 = vpop.f32.mrf.mxu1 }
  0xfc   : > { %v430_v26 = vadd.f32 %v429_v25, %v353_v22  ;;  %v932_v33 = vpop.f32.mrf.mxu0 }
  0xfd   : > { %v917_v28 = vpop.f32.mrf.mxu1 }
  0xfe   : > { %v504_v29 = vadd.f32 %v503_v24, %v430_v26 }
  0xff   : > { %v577_v31 = vpop.f32.mrf.mxu1 }
 0x100   : > { %v578_v32 = vadd.f32 %v577_v31, %v504_v29 }
 0x101   : > { %v927_v35 = vpop.f32.mrf.mxu1 }
 0x102   : > { %v652_v36 = vadd.f32 %v651_v30, %v578_v32 }
 0x103   : > { %v723_v37 = vpop.f32.mrf.mxu1 }
 0x104   : > { %v724_v38 = vadd.f32 %v723_v37, %v652_v36 }
 0x105   : > { %v937_v40 = vpop.f32.mrf.mxu1 }
 0x106   : > { %v729_v41 = vrot.slane %v724_v38, 4  ;;  %v749_v42 = vsub.f32 %v724_v38, %v262_v21  ;;  %v754_v43 = vmul.f32 %v998_v34, %v724_v38 }
 0x108   : > { %v731_v44 = vsel %vm727_vm4, 0.0, %v729_v41  ;;  %v753_v45 = vmul.f32 %v751_v39, %v749_v42  ;;  %999 = vlog2.f32 %v754_v43 }
 0x109   : > { %vm733_vm6 = vcmp.gt.f32.partialorder %v731_v44, 0.0  ;;  %v735_v46 = vand.u32 2147483647, %v731_v44 }
 0x10a   : > { %vm734_vm7 = vmand %vm732_vm5, %vm733_vm6  ;;  %v757_v47 = vmul.f32 10.0, %v753_v45 }
 0x10b   : > { %v736_v48 = vsub.f32 0.0, %v735_v46  ;;  %v893_v49 = vsel %vm734_vm7, 1.0, %v1082_v1 }
 0x10c   : > { %760 = vst [vmem:[%s261_s6 + $0x1] sm:$0x3] %v757_v47  ;;  %764 = vst [vmem:[%s261_s6 + $0x5] sm:$0x1] %v893_v49 }
 0x10d   : > { %v737_v50 = vsel %vm265_vm2, %v736_v48, %v731_v44 }
 0x10e   : > { %vm739_vm8 = vcmp.eq.f32.partialorder %v737_v50, 0.0  ;;  %v745_v54 = vrot.slane %v737_v50, 6 }
 0x10f   : > { %v740_v52 = vsel %vm739_vm8, 1, %v1085_v51 }
 0x110   : > { %v741_v53 = vrot.slane %v740_v52, 6 }
 0x112   : > { %vm742_vm10 = vcmp.ne.s32.totalorder %v741_v53, 0 }
 0x113   : > { %vm743_vm11 = vmand %vm738_vm9, %vm742_vm10 }
 0x114   : > { %v747_v55 = vsel %vm743_vm11, -1.0, %v745_v54 }
 0x115   : > { %v1000_v56 = vpop.eup %999  ;;  %759 = vst [vmem:[%s261_s6 - $0x2] sm:$0x4] %v747_v55 }
 0x116   : > { %v756_v57 = vmul.f32 0.6931472, %v1000_v56 }
 0x118   : > { %v758_v58 = vmul.f32 5.0, %v756_v57 }
 0x11a   : > { %761 = vst [vmem:[%s261_s6 + $0x1] sm:$0xc] %v758_v58 }
 0x11b PF: > { %s16_s17 = sadd.s32 1, %s1079_s17   ;;  %s1263_s12 = smov %s1063_s13 }
 0x11c   : > { %p13_p7 = scmp.ge.s32.totalorder %s16_s17, 4   ;;  %s1264_s13 = smov %s1067_s14 }
 0x11d   : > { %s1265_s14 = smov %s1155_s24  ;;  %s1266_s15 = smov %s1075_s16 }
 0x11e   : > { %s1267_s16 = smov %s1269_s19  ;;  %15 = sbr.rel (!%p13_p7) target bundleno = 4 (0x4), region = 78 }
 0x123   :  { %790 = vsyncpa [#allocation3], 1 }
 0x124   :  { %792 = vsyncpa [#allocation3 + $0x1], 1 }

</bundles_post_ra>
